<compile_context>
chip_gen: v6e
topology: v6e:2x2x1
jax: 0.10.0
libtpu: 0.0.40
codegen_flags: <defaults>
</compile_context>

<pallas_src>
import functools

import jax
import jax.numpy as jnp
from jax.experimental import pallas as pl
from jax.experimental.pallas import tpu as pltpu


# ----------------------------------------------------------------------------
# Pallas kernel: whole forward hot path (4 fused matmuls + relus; merge folded
# into the last weight/bias, so there is no dueling epilogue at all)
# ----------------------------------------------------------------------------
def dueling_qnet_kernel(
    x_ref,
    w1_ref, b1_ref,
    w2_ref, b2_ref,
    wva_ref, bva_ref,        # fused [V_stream | A_stream] hidden weights: (128, 128)
    wq_ref, bq_ref,          # merge-folded output projection: (128, action_dim)
    q_ref,                   # (block_b, action_dim) output
    *,
    compute_dtype,
):
    # fc1 -> relu   (f32 accumulate, f32 bias/relu)
    x = x_ref[...].astype(compute_dtype)
    h1 = jnp.dot(x, w1_ref[...], preferred_element_type=jnp.float32) + b1_ref[...]
    h1 = jnp.maximum(h1, 0.0)

    # fc2 -> relu
    h2 = jnp.dot(h1.astype(compute_dtype), w2_ref[...],
                 preferred_element_type=jnp.float32) + b2_ref[...]
    h2 = jnp.maximum(h2, 0.0)

    # fused value/advantage hidden layer: one lane-dense (128 -> 128) matmul
    hva = jnp.dot(h2.astype(compute_dtype), wva_ref[...],
                  preferred_element_type=jnp.float32) + bva_ref[...]
    hva = jnp.maximum(hva, 0.0)

    # merge-folded output projection: Q directly, no epilogue.
    q = jnp.dot(hva.astype(compute_dtype), wq_ref[...],
                preferred_element_type=jnp.float32) + bq_ref[...]
    q_ref[...] = q.astype(q_ref.dtype)


# ----------------------------------------------------------------------------
# Wrapper: batch-tiled 1-D grid, VMEM-resident weights, narrow Q output
# ----------------------------------------------------------------------------
def _round_up(n, m):
    return ((n + m - 1) // m) * m


def dueling_qnet_forward(x, fused, *, block_b=None):
    """x: (B, state_dim) f32. fused: dict from fuse_params()."""
    batch, state_dim = x.shape
    action_dim = fused["action_dim"]
    compute_dtype = fused["w1"].dtype

    if block_b is None:
        if batch > 8:
            # >= 2 grid steps so v7x's two TensorCores both get work, while
            # keeping blocks <= ~512 rows and the last block not mostly padding.
            n_blocks = max(2, pl.cdiv(batch, 512))
        else:
            n_blocks = 1
        block_b = _round_up(pl.cdiv(batch, n_blocks), 8)
    block_b = _round_up(block_b, 8)
    padded_batch = _round_up(batch, block_b)
    if padded_batch != batch:
        x = jnp.pad(x, ((0, padded_batch - batch), (0, 0)))

    weights = (
        fused["w1"], fused["b1"],
        fused["w2"], fused["b2"],
        fused["w_va"], fused["b_va"],
        fused["w_q"], fused["b_q"],
    )

    kernel = functools.partial(dueling_qnet_kernel, compute_dtype=compute_dtype)

    # Activation tiles stream over a 1-D batch grid; every weight block uses a
    # constant index_map so it is DMA'd once and stays resident in VMEM.
    in_specs = [pl.BlockSpec((block_b, state_dim), lambda i: (i, 0))]
    in_specs += [pl.BlockSpec(w.shape, lambda i: (0, 0)) for w in weights]

    q = pl.pallas_call(
        kernel,
        out_shape=jax.ShapeDtypeStruct((padded_batch, action_dim), jnp.float32),
        grid=(padded_batch // block_b,),
        in_specs=in_specs,
        out_specs=pl.BlockSpec((block_b, action_dim), lambda i: (i, 0)),
        compiler_params=pltpu.CompilerParams(
            dimension_semantics=("parallel",)),
    )(x, *weights)

    return q[:batch]


# ----------------------------------------------------------------------------
# Parameter fusion (wrapper-side, done once):
#   * concat V/A stream hidden weights into one (128, 128) matmul,
#   * fold the dueling merge into the output projection:
#       W_q rows 0:64   = wv[:,0] replicated into every advantage column
#       W_q rows 64:128 = wa[:,j] - mean_k(wa[:,k])
#       b_q[j]          = bv + ba[j] - mean(ba)
#     (exact algebraic identity for Q = V + A - mean(A)).
# All folds built in f32 before any bf16 cast.
# ----------------------------------------------------------------------------
def fuse_params(p, action_dim, *, compute_dtype=jnp.bfloat16):
    hidden_v = p["wvs"].shape[1]                            # 64

    w_va = jnp.concatenate([p["wvs"], p["was"]], axis=1)    # (128, 128)
    b_va = jnp.concatenate([p["bvs"], p["bas"]], axis=1)    # (1, 128)

    wv = p["wv"].astype(jnp.float32)                        # (64, 1)
    wa = p["wa"].astype(jnp.float32)                        # (64, action_dim)
    bv = p["bv"].astype(jnp.float32)                        # (1, 1)
    ba = p["ba"].astype(jnp.float32)                        # (1, action_dim)

    wa_centered = wa - jnp.mean(wa, axis=1, keepdims=True)
    w_q = jnp.concatenate(
        [jnp.broadcast_to(wv, (hidden_v, action_dim)),      # value rows, replicated
         wa_centered],                                       # centered advantage rows
        axis=0)                                              # (128, action_dim)
    b_q = bv + ba - jnp.mean(ba, axis=1, keepdims=True)     # (1, action_dim)

    return dict(
        w1=p["w1"].astype(compute_dtype), b1=p["b1"].astype(jnp.float32),
        w2=p["w2"].astype(compute_dtype), b2=p["b2"].astype(jnp.float32),
        w_va=w_va.astype(compute_dtype), b_va=b_va.astype(jnp.float32),
        w_q=w_q.astype(compute_dtype), b_q=b_q,
        action_dim=action_dim,
    )


# ----------------------------------------------------------------------------
# Deterministic NoisyLinear parameter construction (factorized Gaussian noise).
# TODO(synk): reset_noisy() is a host-side param refresh (re-fold W_eps/b_eps);
# it has no in-kernel equivalent and is handled by re-running fuse_params.
# ----------------------------------------------------------------------------
def _scale_noise(key, n):
    eps = jax.random.normal(key, (n,), dtype=jnp.float32)
    return jnp.sign(eps) * jnp.sqrt(jnp.abs(eps))


def make_noisy_linear(key, in_features, out_features, sigma0=0.5):
    """Returns effective (W, b) with W shaped (in, out) — kernel layout."""
    k_mu_w, k_mu_b, k_eps_in, k_eps_out = jax.random.split(key, 4)
    mu_range = 1.0 / jnp.sqrt(jnp.float32(in_features))

    w_mu = jax.random.uniform(
        k_mu_w, (out_features, in_features), jnp.float32, -mu_range, mu_range)
    b_mu = jax.random.uniform(
        k_mu_b, (out_features,), jnp.float32, -mu_range, mu_range)
    w_sigma = jnp.full((out_features, in_features),
                       sigma0 / jnp.sqrt(jnp.float32(in_features)), jnp.float32)
    b_sigma = jnp.full((out_features,),
                       sigma0 / jnp.sqrt(jnp.float32(in_features)), jnp.float32)

    eps_in = _scale_noise(k_eps_in, in_features)
    eps_out = _scale_noise(k_eps_out, out_features)
    w_eps = jnp.outer(eps_out, eps_in)   # (out, in)
    b_eps = eps_out

    w_eff = w_mu + w_sigma * w_eps       # (out, in)
    b_eff = b_mu + b_sigma * b_eps       # (out,)

    # Transpose to kernel layout (in, out); bias as (1, out) for 2D broadcast.
    return w_eff.T, b_eff.reshape(1, out_features)


def make_dueling_params(key, state_dim, action_dim):
    keys = jax.random.split(key, 6)
    w1, b1 = make_noisy_linear(keys[0], state_dim, 64)
    w2, b2 = make_noisy_linear(keys[1], 64, 128)
    wvs, bvs = make_noisy_linear(keys[2], 128, 64)
    wv, bv = make_noisy_linear(keys[3], 64, 1)
    was, bas = make_noisy_linear(keys[4], 128, 64)
    wa, ba = make_noisy_linear(keys[5], 64, action_dim)
    return dict(w1=w1, b1=b1, w2=w2, b2=b2, wvs=wvs, bvs=bvs,
                wv=wv, bv=bv, was=was, bas=bas, wa=wa, ba=ba)


# ----------------------------------------------------------------------------
# Pure-JAX reference (unfused) for sanity check
# ----------------------------------------------------------------------------
def reference_forward(x, p):
    h1 = jax.nn.relu(x @ p["w1"] + p["b1"])
    h2 = jax.nn.relu(h1 @ p["w2"] + p["b2"])
    v = jax.nn.relu(h2 @ p["wvs"] + p["bvs"]) @ p["wv"] + p["bv"]
    a = jax.nn.relu(h2 @ p["was"] + p["bas"]) @ p["wa"] + p["ba"]
    return v + (a - a.mean(axis=1, keepdims=True))


if __name__ == "__main__":
    batch = 2
    state_dim = 8
    action_dim = 4

    key = jax.random.PRNGKey(0)
    k_x, k_p, k_x2 = jax.random.split(key, 3)

    x = jax.random.normal(k_x, (batch, state_dim), dtype=jnp.float32)
    params = make_dueling_params(k_p, state_dim, action_dim)
    q_ref = reference_forward(x, params)

    # f32 path (exact semantics, tight tolerance).
    fused_f32 = fuse_params(params, action_dim, compute_dtype=jnp.float32)
    q = jax.block_until_ready(dueling_qnet_forward(x, fused_f32))
    assert q.shape == (batch, action_dim)
    assert jnp.allclose(q, q_ref, atol=1e-4, rtol=1e-4)

    # Multi-step grid + batch padding check (batch=20 -> 2 blocks of 16 rows).
    x_big = jax.random.normal(k_x2, (20, state_dim), dtype=jnp.float32)
    q_big = jax.block_until_ready(dueling_qnet_forward(x_big, fused_f32))
    q_big_ref = reference_forward(x_big, params)
    assert q_big.shape == (20, action_dim)
    assert jnp.allclose(q_big, q_big_ref, atol=1e-4, rtol=1e-4)

    # Explicit small-block grid check (grid = 3 blocks of 8 rows).
    q_big2 = jax.block_until_ready(
        dueling_qnet_forward(x_big, fused_f32, block_b=8))
    assert jnp.allclose(q_big2, q_big_ref, atol=1e-4, rtol=1e-4)

    # Default bf16-matmul path (v6e/v7x-leaning): bf16 MXU operands, f32
    # accumulation and f32 bias/relu; looser tolerance per bf16 mantissa.
    fused_bf16 = fuse_params(params, action_dim)
    q_bf16 = jax.block_until_ready(dueling_qnet_forward(x, fused_bf16))
    assert jnp.allclose(q_bf16, q_ref, atol=1e-1, rtol=1e-1)

    print("KERNEL_OK")
</pallas_src>

<mosaic_0001>
module attributes {stable_mosaic.version = 11 : i64} {
  func.func @dueling_qnet_kernel(%arg0: i32, %arg1: memref<8x8xf32, #tpu.memory_space<vmem>>, %arg2: memref<8x64xf32, #tpu.memory_space<vmem>>, %arg3: memref<1x64xf32, #tpu.memory_space<vmem>>, %arg4: memref<64x128xf32, #tpu.memory_space<vmem>>, %arg5: memref<1x128xf32, #tpu.memory_space<vmem>>, %arg6: memref<128x128xf32, #tpu.memory_space<vmem>>, %arg7: memref<1x128xf32, #tpu.memory_space<vmem>>, %arg8: memref<128x4xf32, #tpu.memory_space<vmem>>, %arg9: memref<1x4xf32, #tpu.memory_space<vmem>>, %arg10: memref<8x4xf32, #tpu.memory_space<vmem>>) attributes {dimension_semantics = [#tpu.dimension_semantics<parallel>], iteration_bounds = array<i64: 1>, scalar_prefetch = 0 : i64, scratch_operands = 0 : i64, tpu.core_type = #tpu.core_type<tc>, window_params = [{transform_indices = @transform_0, window_bounds = array<i64: 8, 8>}, {pipeline_mode = #tpu.pipeline_mode<synchronous>, transform_indices = @transform_1, window_bounds = array<i64: 8, 64>}, {pipeline_mode = #tpu.pipeline_mode<synchronous>, transform_indices = @transform_2, window_bounds = array<i64: 1, 64>}, {pipeline_mode = #tpu.pipeline_mode<synchronous>, transform_indices = @transform_3, window_bounds = array<i64: 64, 128>}, {pipeline_mode = #tpu.pipeline_mode<synchronous>, transform_indices = @transform_4, window_bounds = array<i64: 1, 128>}, {pipeline_mode = #tpu.pipeline_mode<synchronous>, transform_indices = @transform_5, window_bounds = array<i64: 128, 128>}, {pipeline_mode = #tpu.pipeline_mode<synchronous>, transform_indices = @transform_6, window_bounds = array<i64: 1, 128>}, {pipeline_mode = #tpu.pipeline_mode<synchronous>, transform_indices = @transform_7, window_bounds = array<i64: 128, 4>}, {pipeline_mode = #tpu.pipeline_mode<synchronous>, transform_indices = @transform_8, window_bounds = array<i64: 1, 4>}, {transform_indices = @transform_9, window_bounds = array<i64: 8, 4>}]} {
    %c0 = arith.constant 0 : index
    %c0_0 = arith.constant 0 : index
    %0 = vector.load %arg1[%c0, %c0_0] : memref<8x8xf32, #tpu.memory_space<vmem>>, vector<8x8xf32>
    %c0_1 = arith.constant 0 : index
    %c0_2 = arith.constant 0 : index
    %1 = vector.load %arg2[%c0_1, %c0_2] : memref<8x64xf32, #tpu.memory_space<vmem>>, vector<8x64xf32>
    %cst = arith.constant dense<0.000000e+00> : vector<8x64xf32>
    %2 = tpu.matmul %0, %1, %cst {dimension_numbers = #tpu.dot_dimension_numbers<[1], [0], [0], [1], [0, 0, 1, 1], [], []>} : vector<8x8xf32>, vector<8x64xf32>, vector<8x64xf32> -> vector<8x64xf32>
    %c0_3 = arith.constant 0 : index
    %c0_4 = arith.constant 0 : index
    %3 = vector.load %arg3[%c0_3, %c0_4] : memref<1x64xf32, #tpu.memory_space<vmem>>, vector<1x64xf32>
    %4 = vector.broadcast %3 : vector<1x64xf32> to vector<8x64xf32>
    %5 = arith.addf %2, %4 : vector<8x64xf32>
    %cst_5 = arith.constant 0.000000e+00 : f32
    %6 = vector.broadcast %cst_5 : f32 to vector<8x64xf32>
    %7 = arith.maximumf %5, %6 : vector<8x64xf32>
    %c0_6 = arith.constant 0 : index
    %c0_7 = arith.constant 0 : index
    %8 = vector.load %arg4[%c0_6, %c0_7] : memref<64x128xf32, #tpu.memory_space<vmem>>, vector<64x128xf32>
    %cst_8 = arith.constant dense<0.000000e+00> : vector<8x128xf32>
    %9 = tpu.matmul %7, %8, %cst_8 {dimension_numbers = #tpu.dot_dimension_numbers<[1], [0], [0], [1], [0, 0, 1, 1], [], []>} : vector<8x64xf32>, vector<64x128xf32>, vector<8x128xf32> -> vector<8x128xf32>
    %c0_9 = arith.constant 0 : index
    %c0_10 = arith.constant 0 : index
    %10 = vector.load %arg5[%c0_9, %c0_10] : memref<1x128xf32, #tpu.memory_space<vmem>>, vector<1x128xf32>
    %11 = vector.broadcast %10 : vector<1x128xf32> to vector<8x128xf32>
    %12 = arith.addf %9, %11 : vector<8x128xf32>
    %cst_11 = arith.constant 0.000000e+00 : f32
    %13 = vector.broadcast %cst_11 : f32 to vector<8x128xf32>
    %14 = arith.maximumf %12, %13 : vector<8x128xf32>
    %c0_12 = arith.constant 0 : index
    %c0_13 = arith.constant 0 : index
    %15 = vector.load %arg6[%c0_12, %c0_13] : memref<128x128xf32, #tpu.memory_space<vmem>>, vector<128x128xf32>
    %cst_14 = arith.constant dense<0.000000e+00> : vector<8x128xf32>
    %16 = tpu.matmul %14, %15, %cst_14 {dimension_numbers = #tpu.dot_dimension_numbers<[1], [0], [0], [1], [0, 0, 1, 1], [], []>} : vector<8x128xf32>, vector<128x128xf32>, vector<8x128xf32> -> vector<8x128xf32>
    %c0_15 = arith.constant 0 : index
    %c0_16 = arith.constant 0 : index
    %17 = vector.load %arg7[%c0_15, %c0_16] : memref<1x128xf32, #tpu.memory_space<vmem>>, vector<1x128xf32>
    %18 = vector.broadcast %17 : vector<1x128xf32> to vector<8x128xf32>
    %19 = arith.addf %16, %18 : vector<8x128xf32>
    %cst_17 = arith.constant 0.000000e+00 : f32
    %20 = vector.broadcast %cst_17 : f32 to vector<8x128xf32>
    %21 = arith.maximumf %19, %20 : vector<8x128xf32>
    %c0_18 = arith.constant 0 : index
    %c0_19 = arith.constant 0 : index
    %22 = vector.load %arg8[%c0_18, %c0_19] : memref<128x4xf32, #tpu.memory_space<vmem>>, vector<128x4xf32>
    %cst_20 = arith.constant dense<0.000000e+00> : vector<8x4xf32>
    %23 = tpu.matmul %21, %22, %cst_20 {dimension_numbers = #tpu.dot_dimension_numbers<[1], [0], [0], [1], [0, 0, 1, 1], [], []>} : vector<8x128xf32>, vector<128x4xf32>, vector<8x4xf32> -> vector<8x4xf32>
    %c0_21 = arith.constant 0 : index
    %c0_22 = arith.constant 0 : index
    %24 = vector.load %arg9[%c0_21, %c0_22] : memref<1x4xf32, #tpu.memory_space<vmem>>, vector<1x4xf32>
    %25 = vector.broadcast %24 : vector<1x4xf32> to vector<8x4xf32>
    %26 = arith.addf %23, %25 : vector<8x4xf32>
    %c0_23 = arith.constant 0 : index
    %c0_24 = arith.constant 0 : index
    %27 = vector.load %arg10[%c0_23, %c0_24] : memref<8x4xf32, #tpu.memory_space<vmem>>, vector<8x4xf32>
    tpu.vector_store %arg10[%c0_23, %c0_24], %26 {strides = array<i32>} : memref<8x4xf32, #tpu.memory_space<vmem>>, vector<8x4xf32>,
    return
  }
  func.func @transform_0(%arg0: i32) -> (i32, i32) {
    %c0_i32 = arith.constant 0 : i32
    %c0_i32_0 = arith.constant 0 : i32
    return %arg0, %c0_i32 : i32, i32
  }
  func.func @transform_1(%arg0: i32) -> (i32, i32) {
    %c0_i32 = arith.constant 0 : i32
    %c0_i32_0 = arith.constant 0 : i32
    %c0_i32_1 = arith.constant 0 : i32
    return %c0_i32, %c0_i32_0 : i32, i32
  }
  func.func @transform_2(%arg0: i32) -> (i32, i32) {
    %c0_i32 = arith.constant 0 : i32
    %c0_i32_0 = arith.constant 0 : i32
    %c0_i32_1 = arith.constant 0 : i32
    return %c0_i32, %c0_i32_0 : i32, i32
  }
  func.func @transform_3(%arg0: i32) -> (i32, i32) {
    %c0_i32 = arith.constant 0 : i32
    %c0_i32_0 = arith.constant 0 : i32
    %c0_i32_1 = arith.constant 0 : i32
    return %c0_i32, %c0_i32_0 : i32, i32
  }
  func.func @transform_4(%arg0: i32) -> (i32, i32) {
    %c0_i32 = arith.constant 0 : i32
    %c0_i32_0 = arith.constant 0 : i32
    %c0_i32_1 = arith.constant 0 : i32
    return %c0_i32, %c0_i32_0 : i32, i32
  }
  func.func @transform_5(%arg0: i32) -> (i32, i32) {
    %c0_i32 = arith.constant 0 : i32
    %c0_i32_0 = arith.constant 0 : i32
    %c0_i32_1 = arith.constant 0 : i32
    return %c0_i32, %c0_i32_0 : i32, i32
  }
  func.func @transform_6(%arg0: i32) -> (i32, i32) {
    %c0_i32 = arith.constant 0 : i32
    %c0_i32_0 = arith.constant 0 : i32
    %c0_i32_1 = arith.constant 0 : i32
    return %c0_i32, %c0_i32_0 : i32, i32
  }
  func.func @transform_7(%arg0: i32) -> (i32, i32) {
    %c0_i32 = arith.constant 0 : i32
    %c0_i32_0 = arith.constant 0 : i32
    %c0_i32_1 = arith.constant 0 : i32
    return %c0_i32, %c0_i32_0 : i32, i32
  }
  func.func @transform_8(%arg0: i32) -> (i32, i32) {
    %c0_i32 = arith.constant 0 : i32
    %c0_i32_0 = arith.constant 0 : i32
    %c0_i32_1 = arith.constant 0 : i32
    return %c0_i32, %c0_i32_0 : i32, i32
  }
  func.func @transform_9(%arg0: i32) -> (i32, i32) {
    %c0_i32 = arith.constant 0 : i32
    %c0_i32_0 = arith.constant 0 : i32
    return %arg0, %c0_i32 : i32, i32
  }
}

</mosaic_0001>

<bundles_post_ra>
// kernel: tpu_custom_call.1
= control target key start
LH: loop header
LB: loop body
LE: loop exit
PB: predicated region body
PF: predicated region fallthrough
CT: control target
= control target key end

     0   :  { %14 = vsyncpa [#allocation3], 0  ;;  %s880_s0 = inlined_call_operand.vmem [shape: f32[8,8], index: 0, kind: input, shape index: {}]   ;;  %s881_s1 = inlined_call_operand.hbm [shape: f32[8,64], index: 1, kind: input, shape index: {}]   ;;  %s882_s2 = inlined_call_operand.vmem [shape: f32[1,64], index: 2, kind: input, shape index: {}]   ;;  %s883_s3 = inlined_call_operand.hbm [shape: f32[64,128], index: 3, kind: input, shape index: {}]   ;;  %s884_s4 = inlined_call_operand.vmem [shape: f32[1,128], index: 4, kind: input, shape index: {}]   ;;  %s885_s5 = inlined_call_operand.vmem [shape: f32[128,128], index: 5, kind: input, shape index: {}]   ;;  %s886_s6 = inlined_call_operand.hbm [shape: f32[1,128], index: 6, kind: input, shape index: {}]   ;;  %s887_s7 = inlined_call_operand.vmem [shape: f32[128,4], index: 7, kind: input, shape index: {}]   ;;  %s888_s8 = inlined_call_operand.vmem [shape: f32[1,4], index: 8, kind: input, shape index: {}]   ;;  %s889_s9 = inlined_call_operand.vmem [shape: f32[8,4], index: 9, kind: output, shape index: {}]  }
   0x1   :  { %15 = vsyncpa [#allocation5], 0  ;;  %s654_s30 = smov [#allocation4]  }
   0x2   :  { %s35_s10 = sshll.u32 %s654_s30, 4  ;;  %s36_s10 = int_to_ptr.vmem [resolvable:$true] %s35_s10 }
   0x3   :  { %s598_s11 = scalar_lea.vmem %s36_s10, 1024  ;;  %p603_p1 = scmp.lt.s32.totalorder %s36_s10, %s36_s10 }
   0x4   :  { %p599_p0 = scmp.ne.s32.totalorder %s36_s10, %s598_s11  ;;  %p604_p2 = scmp.lt.s32.totalorder %s598_s11, %s598_s11 }
   0x6   :  { %p605_p3 = por %p604_p2, %p603_p1 }
   0x8   :  { %p606_p4 = pnand %p605_p3, %p599_p0 }
   0xa   :  { %609 = shalt.err (!%p606_p4)
}
   0xb   :  { %s655_s12 = smov 128   ;;  %s656_s13 = smov 8  }
   0xc   :  { %41 = dma.hbm_to_vmem [thread:$0]  %s883_s3, 1024, %s36_s10, [#allocation5], %s655_s12, %s655_s12, %s656_s13  }
   0xd   :  { %s657_s16 = smov [#allocation2]   ;;  %s658_s18 = smov [#allocation6]  }
   0xe   :  { %s24_s17 = sshll.u32 %s657_s16, 4  ;;  %s52_s19 = sshll.u32 %s658_s18, 4  ;;  %s25_s17 = int_to_ptr.vmem [resolvable:$true] %s24_s17  ;;  %s53_s19 = int_to_ptr.vmem [resolvable:$true] %s52_s19 }
   0xf   :  { %s618_s20 = scalar_lea.vmem %s25_s17, 128  ;;  %p623_p6 = scmp.lt.s32.totalorder %s25_s17, %s25_s17 }
  0x10   :  { %p619_p5 = scmp.ne.s32.totalorder %s25_s17, %s618_s20  ;;  %p624_p7 = scmp.lt.s32.totalorder %s618_s20, %s618_s20 }
  0x12   :  { %p625_p8 = por %p624_p7, %p623_p6 }
  0x14   :  { %p626_p9 = pnand %p625_p8, %p619_p5 }
  0x16   :  { %629 = shalt.err (!%p626_p9)
}
  0x17   :  { %27 = dma.hbm_to_vmem [thread:$0]  %s881_s1, 128, %s25_s17, [#allocation3]  }
  0x18   :  { %s638_s23 = scalar_lea.vmem %s53_s19, 16  ;;  %s642_s3 = scalar_lea.vmem %s53_s19, 32 }
  0x19   :  { %p639_p10 = scmp.ne.s32.totalorder %s53_s19, %s638_s23  ;;  %p643_p11 = scmp.lt.s32.totalorder %s53_s19, %s53_s19 }
  0x1a   :  { %p644_p12 = scmp.lt.s32.totalorder %s642_s3, %s638_s23 }
  0x1c   :  { %p645_p13 = por %p644_p12, %p643_p11 }
  0x1e   :  { %p646_p0 = pnand %p645_p13, %p639_p10 }
  0x20   :  { %649 = shalt.err (!%p646_p0)
}
  0x21   :  { %55 = dma.hbm_to_vmem [thread:$0]  %s886_s6, 16, %s53_s19, [#allocation5]  }
  0x22   :  { %650 = dma.done.wait [#allocation3], 128  }
  0x23   :  { %651 = vsyncadd [#allocation3], 4294967168 }
  0x24   :  { %652 = dma.done.wait [#allocation5], 1040  }
  0x25   :  { %653 = vsyncadd [#allocation5], 4294966256  ;;  %v659_v0 = vmov 0.0   ;;  %vm660_vm0 = vmmov 0   ;;  %vm78_vm1 = vcmask 64512   ;;  %v70_v1 = vld [vmem:[#allocation2] sm:$0xff] }
  0x26   :  { %489 = vmatprep.subr.mxu0 %v659_v0  ;;  %491 = vmatprep.mubr.msk.f32.mxu0 %vm660_vm0, %v659_v0  ;;  %v69_v2 = vld [vmem:[%s880_s0] sm:$0xff]  ;;  %v159_v4 = vld [vmem:[#allocation4 + $0x30] sm:$0xff]  ;;  %v158_v5 = vld [vmem:[#allocation4 + $0x28] sm:$0xff]  ;;  %vm168_vm2 = vcmask 523264   ;;  %vm430_vm3 = vcmask 31744  }
  0x27   :  { %494 = vmatprep.subr.mxu1 %v659_v0  ;;  %510 = vmatprep.mubr.msk.f32.mxu1 %vm660_vm0, %v659_v0  ;;  %v160_v3 = vld [vmem:[#allocation4 + $0x38] sm:$0xff]  ;;  %v157_v6 = vld [vmem:[#allocation4 + $0x20] sm:$0xff]  ;;  %v155_v8 = vld [vmem:[#allocation4 + $0x10] sm:$0xff] }
  0x28   :  { %490 = vmatpush3.msra.mxu0 %v70_v1  ;;  %495 = vmatpush3.msra.mxu1 %v160_v3  ;;  %v156_v7 = vld [vmem:[#allocation4 + $0x18] sm:$0xff]  ;;  %v154_v9 = vld [vmem:[#allocation4 + $0x8] sm:$0xff]  ;;  %v153_v10 = vld [vmem:[#allocation4] sm:$0xff] }
  0x29   :  { %492 = vmatmul.mubr.msk.f32.vlgmr.msra.gmra.mxu0 %vm78_vm1, %v69_v2  ;;  %496 = vmatprep.subr.mxu1 %v659_v0  ;;  %v258_v11 = vld [vmem:[%s885_s5 + $0x78] sm:$0xff]  ;;  %v257_v12 = vld [vmem:[%s885_s5 + $0x70] sm:$0xff]  ;;  %v256_v13 = vld [vmem:[%s885_s5 + $0x68] sm:$0xff] }
  0x2a   :  { %497 = vmatpush3.msra.mxu1 %v159_v4  ;;  %513 = vmatprep.subr.mxu0 %v659_v0  ;;  %v255_v14 = vld [vmem:[%s885_s5 + $0x60] sm:$0xff]  ;;  %v254_v15 = vld [vmem:[%s885_s5 + $0x58] sm:$0xff]  ;;  %v253_v16 = vld [vmem:[%s885_s5 + $0x50] sm:$0xff] }
  0x2b   :  { %498 = vmatprep.subr.mxu1 %v659_v0  ;;  %545 = vmatprep.mubr.msk.f32.mxu0 %vm660_vm0, %v659_v0  ;;  %v252_v17 = vld [vmem:[%s885_s5 + $0x48] sm:$0xff]  ;;  %v251_v18 = vld [vmem:[%s885_s5 + $0x40] sm:$0xff]  ;;  %v250_v19 = vld [vmem:[%s885_s5 + $0x38] sm:$0xff] }
  0x2c   :  { %499 = vmatpush3.msra.mxu1 %v158_v5  ;;  %514 = vmatpush3.msra.mxu0 %v258_v11  ;;  %v249_v20 = vld [vmem:[%s885_s5 + $0x30] sm:$0xff]  ;;  %v248_v21 = vld [vmem:[%s885_s5 + $0x28] sm:$0xff]  ;;  %v247_v22 = vld [vmem:[%s885_s5 + $0x20] sm:$0xff] }
  0x2d   :  { %500 = vmatprep.subr.mxu1 %v659_v0  ;;  %515 = vmatprep.subr.mxu0 %v659_v0  ;;  %v246_v23 = vld [vmem:[%s885_s5 + $0x18] sm:$0xff]  ;;  %v438_v24 = vld [vmem:[%s882_s2] ss:$0 sm:$0xff]  ;;  %v245_v29 = vld [vmem:[%s885_s5 + $0x10] sm:$0xff] }
  0x2e   :  { %501 = vmatpush3.msra.mxu1 %v157_v6  ;;  %516 = vmatpush3.msra.mxu0 %v257_v12  ;;  %v244_v30 = vld [vmem:[%s885_s5 + $0x8] sm:$0xff]  ;;  %v243_v31 = vld [vmem:[%s885_s5] sm:$0xff]  ;;  %v352_v32 = vld [vmem:[%s887_s7 + $0x78] sm:$0xff] }
  0x2f   :  { %502 = vmatprep.subr.mxu1 %v659_v0  ;;  %517 = vmatprep.subr.mxu0 %v659_v0  ;;  %v351_v33 = vld [vmem:[%s887_s7 + $0x70] sm:$0xff]  ;;  %v350_v34 = vld [vmem:[%s887_s7 + $0x68] sm:$0xff]  ;;  %v349_v35 = vld [vmem:[%s887_s7 + $0x60] sm:$0xff] }
  0x30   :  { %503 = vmatpush3.msra.mxu1 %v156_v7  ;;  %518 = vmatpush3.msra.mxu0 %v256_v13  ;;  %v348_v36 = vld [vmem:[%s887_s7 + $0x58] sm:$0xff]  ;;  %v347_v37 = vld [vmem:[%s887_s7 + $0x50] sm:$0xff]  ;;  %v346_v38 = vld [vmem:[%s887_s7 + $0x48] sm:$0xff] }
  0x31   :  { %504 = vmatprep.subr.mxu1 %v659_v0  ;;  %519 = vmatprep.subr.mxu0 %v659_v0  ;;  %v345_v39 = vld [vmem:[%s887_s7 + $0x40] sm:$0xff]  ;;  %v344_v40 = vld [vmem:[%s887_s7 + $0x38] sm:$0xff]  ;;  %v343_v41 = vld [vmem:[%s887_s7 + $0x30] sm:$0xff] }
  0x32   :  { %505 = vmatpush3.msra.mxu1 %v155_v8  ;;  %520 = vmatpush3.msra.mxu0 %v255_v14  ;;  %v342_v42 = vld [vmem:[%s887_s7 + $0x28] sm:$0xff]  ;;  %v341_v43 = vld [vmem:[%s887_s7 + $0x20] sm:$0xff]  ;;  %v340_v44 = vld [vmem:[%s887_s7 + $0x18] sm:$0xff] }
  0x33   :  { %506 = vmatprep.subr.mxu1 %v659_v0  ;;  %521 = vmatprep.subr.mxu0 %v659_v0  ;;  %v440_v45 = vld [vmem:[%s884_s4] ss:$0 sm:$0xff]  ;;  %v339_v50 = vld [vmem:[%s887_s7 + $0x10] sm:$0xff]  ;;  %v338_v51 = vld [vmem:[%s887_s7 + $0x8] sm:$0xff] }
  0x34   :  { %507 = vmatpush3.msra.mxu1 %v154_v9  ;;  %522 = vmatpush3.msra.mxu0 %v254_v15  ;;  %v337_v52 = vld [vmem:[%s887_s7] sm:$0xff]  ;;  %v442_v53 = vld [vmem:[#allocation6] ss:$0 sm:$0xff] }
  0x35   :  { %508 = vmatprep.subr.mxu1 %v659_v0  ;;  %523 = vmatprep.subr.mxu0 %v659_v0  ;;  %v443_v58 = vld [vmem:[%s888_s8] ss:$0 sm:$0xff] }
  0x36   :  { %509 = vmatpush3.msra.mxu1 %v153_v10  ;;  %524 = vmatpush3.msra.mxu0 %v253_v16 }
  0x37   :  { %548 = vmatprep.subr.mxu1 %v659_v0  ;;  %525 = vmatprep.subr.mxu0 %v659_v0 }
  0x38   :  { %526 = vmatpush3.msra.mxu0 %v252_v17 }
  0x39   :  { %527 = vmatprep.subr.mxu0 %v659_v0 }
  0x3a   :  { %528 = vmatpush3.msra.mxu0 %v251_v18 }
  0x3b   :  { %529 = vmatprep.subr.mxu0 %v659_v0 }
  0x3c   :  { %530 = vmatpush3.msra.mxu0 %v250_v19 }
  0x3d   :  { %531 = vmatprep.subr.mxu0 %v659_v0 }
  0x3e   :  { %532 = vmatpush3.msra.mxu0 %v249_v20 }
  0x3f   :  { %533 = vmatprep.subr.mxu0 %v659_v0 }
  0x40   :  { %534 = vmatpush3.msra.mxu0 %v248_v21 }
  0x41   :  { %535 = vmatprep.subr.mxu0 %v659_v0 }
  0x42   :  { %536 = vmatpush3.msra.mxu0 %v247_v22 }
  0x43   :  { %537 = vmatprep.subr.mxu0 %v659_v0 }
  0x44   :  { %538 = vmatpush3.msra.mxu0 %v246_v23 }
  0x45   :  { %539 = vmatprep.subr.mxu0 %v659_v0 }
  0x46   :  { %540 = vmatpush3.msra.mxu0 %v245_v29 }
  0x47   :  { %541 = vmatprep.subr.mxu0 %v659_v0 }
  0x48   :  { %542 = vmatpush3.msra.mxu0 %v244_v30 }
  0x49   :  { %543 = vmatprep.subr.mxu0 %v659_v0 }
  0x4a   :  { %544 = vmatpush3.msra.mxu0 %v243_v31 }
  0xe9   :  { %v148_v25 = vpop.f32.mrf.mxu0 }
  0xea   :  { %v149_v26 = vadd.f32 %v438_v24, %v148_v25 }
  0xeb   :  { %v493_v27 = vpop.f32.mrf.mxu0 }
  0xec   :  { %v152_v28 = vmax.f32 %v149_v26, 0.0 }
  0xee   :  { %511 = vmatmul.mubr.msk.f32.vlgmr.msra.gmra.mxu1 %vm168_vm2, %v152_v28 }
  0xef   :  { %580 = vmatprep.mubr.msk.f32.mxu1 %vm660_vm0, %v659_v0  ;;  %549 = vmatpush3.msra.mxu1 %v352_v32 }
  0xf0   :  { %550 = vmatprep.subr.mxu1 %v659_v0 }
  0xf1   :  { %551 = vmatpush3.msra.mxu1 %v351_v33 }
  0xf2   :  { %552 = vmatprep.subr.mxu1 %v659_v0 }
  0xf3   :  { %553 = vmatpush3.msra.mxu1 %v350_v34 }
  0xf4   :  { %554 = vmatprep.subr.mxu1 %v659_v0 }
  0xf5   :  { %555 = vmatpush3.msra.mxu1 %v349_v35 }
  0xf6   :  { %556 = vmatprep.subr.mxu1 %v659_v0 }
  0xf7   :  { %557 = vmatpush3.msra.mxu1 %v348_v36 }
  0xf8   :  { %558 = vmatprep.subr.mxu1 %v659_v0 }
  0xf9   :  { %559 = vmatpush3.msra.mxu1 %v347_v37 }
  0xfa   :  { %560 = vmatprep.subr.mxu1 %v659_v0 }
  0xfb   :  { %561 = vmatpush3.msra.mxu1 %v346_v38 }
  0xfc   :  { %562 = vmatprep.subr.mxu1 %v659_v0 }
  0xfd   :  { %563 = vmatpush3.msra.mxu1 %v345_v39 }
  0xfe   :  { %564 = vmatprep.subr.mxu1 %v659_v0 }
  0xff   :  { %565 = vmatpush3.msra.mxu1 %v344_v40 }
 0x100   :  { %566 = vmatprep.subr.mxu1 %v659_v0 }
 0x101   :  { %567 = vmatpush3.msra.mxu1 %v343_v41 }
 0x102   :  { %568 = vmatprep.subr.mxu1 %v659_v0 }
 0x103   :  { %569 = vmatpush3.msra.mxu1 %v342_v42 }
 0x104   :  { %570 = vmatprep.subr.mxu1 %v659_v0 }
 0x105   :  { %571 = vmatpush3.msra.mxu1 %v341_v43 }
 0x106   :  { %572 = vmatprep.subr.mxu1 %v659_v0 }
 0x107   :  { %573 = vmatpush3.msra.mxu1 %v340_v44 }
 0x108   :  { %574 = vmatprep.subr.mxu1 %v659_v0 }
 0x109   :  { %575 = vmatpush3.msra.mxu1 %v339_v50 }
 0x10a   :  { %576 = vmatprep.subr.mxu1 %v659_v0 }
 0x10b   :  { %577 = vmatpush3.msra.mxu1 %v338_v51 }
 0x10c   :  { %578 = vmatprep.subr.mxu1 %v659_v0 }
 0x10d   :  { %579 = vmatpush3.msra.mxu1 %v337_v52 }
 0x1ae   :  { %v238_v46 = vpop.f32.mrf.mxu1 }
 0x1af   :  { %v239_v47 = vadd.f32 %v440_v45, %v238_v46 }
 0x1b0   :  { %v512_v48 = vpop.f32.mrf.mxu1 }
 0x1b1   :  { %v242_v49 = vmax.f32 %v239_v47, 0.0 }
 0x1b3   :  { %546 = vmatmul.mubr.f32.vlgmr.msra.gmra.mxu0 %v242_v49 }
 0x273   :  { %v332_v54 = vpop.f32.mrf.mxu0 }
 0x274   :  { %v333_v55 = vadd.f32 %v442_v53, %v332_v54 }
 0x275   :  { %v547_v56 = vpop.f32.mrf.mxu0 }
 0x276   :  { %v336_v57 = vmax.f32 %v333_v55, 0.0 }
 0x278   :  { %581 = vmatmul.mubr.f32.vlgmr.msra.gmra.mxu1 %v336_v57 }
 0x338   :  { %v426_v59 = vpop.f32.mrf.mxu1 }
 0x339   :  { %v427_v60 = vadd.f32 %v443_v58, %v426_v59 }
 0x33a   :  { %v582_v61 = vpop.f32.mrf.mxu1 }
 0x33b   :  { %431 = vst.msk [vmem:[%s889_s9] sm:$0xff] %vm430_vm3, %v427_v60 }
 0x33c   :  { %436 = vsyncpa [#allocation3], 1 }
 0x33d   :  { %437 = vsyncpa [#allocation5], 1 }

</bundles_post_ra>
